<compile_context>
chip_gen: v7x
topology: tpu7x:2x2x1
jax: 0.10.0
libtpu: 0.0.40
codegen_flags: <defaults>
</compile_context>

<pallas_src>
import functools

import jax
import jax.numpy as jnp
from jax.experimental import pallas as pl
from jax.experimental.pallas import tpu as pltpu


def _mlp_kernel(x_ref, w1_ref, b1_ref, w2_ref, b2_ref, w3_ref, b3_ref, o_ref):
    # x_ref : (3, TB)    f32  input features x batch tile (batch on lanes)
    # w1_ref: (128, 3)   bf16 fc1.weight (PyTorch layout), VMEM-resident
    # b1_ref: (128, 1)   f32  fc1.bias as a column
    # w2_ref: (64, 128)  bf16 fc2.weight, VMEM-resident
    # b2_ref: (64, 1)    f32  fc2.bias as a column
    # w3_ref: (64, 1)    f32  fc3.weight as a column
    # b3_ref: (1,)       f32  fc3.bias, SMEM scalar
    # o_ref : (1, 1, TB) f32  sigmoid output, batch on lanes (lane-dense vst)
    xb = x_ref[...].astype(jnp.bfloat16)                          # (3, TB), cheap

    # ---- fc1 (3 -> 128) on the MXU; bias + ReLU stay f32 on the VPU --------
    h1 = jnp.dot(w1_ref[...], xb,
                 preferred_element_type=jnp.float32) + b1_ref[...]  # (128, TB)
    h1 = jnp.maximum(h1, 0.0)

    # ---- fc2 (128 -> 64) on the MXU: bf16 operands, f32 accumulate ---------
    h2 = jnp.dot(w2_ref[...], h1.astype(jnp.bfloat16),
                 preferred_element_type=jnp.float32) + b2_ref[...]  # (64, TB)
    h2 = jnp.maximum(h2, 0.0)

    # ---- fc3 (N=1): VPU multiply + XLU sublane reduce (both have slack) ----
    z = jnp.sum(h2 * w3_ref[...], axis=0, keepdims=True) + b3_ref[0]  # (1, TB)
    o_ref[0] = jax.nn.sigmoid(z)


def _round_up(n, m):
    return -(-n // m) * m


def _choose_batch_tile(batch, block_b):
    """Lane-aligned batch tile: big enough to amortize per-step overhead,
    small enough to keep >=2 grid steps (v7x megacore) for non-tiny batches."""
    full = _round_up(max(batch, 1), 128)
    if full <= 256:               # tiny batch: single tile, no padding waste
        return full
    half = _round_up(-(-batch // 2), 128)
    return max(128, min(block_b, half))


@functools.partial(jax.jit, static_argnames=("block_b",))
def drug_interaction_forward(x, params, *, block_b=2048):
    """x: (B, 3) float32; params in PyTorch nn.Linear layout; returns (B, 1)."""
    assert block_b % 128 == 0 and 128 <= block_b <= 8192, block_b
    w1, b1, w2, b2, w3, b3 = params
    B = x.shape[0]
    TB = _choose_batch_tile(B, block_b)
    G = pl.cdiv(B, TB)
    B_pad = G * TB

    # Batch on the lane axis everywhere (lane-dense loads/stores). The
    # transpose/pad below is eligible for input fusion into the custom call.
    xt = jnp.pad(x.astype(jnp.float32).T, ((0, 0), (0, B_pad - B)))   # (3, B_pad)

    # One-time weight casts for the MXU fast path (weights are VMEM-resident).
    w1b = w1.astype(jnp.bfloat16)          # (128, 3)
    w2b = w2.astype(jnp.bfloat16)          # (64, 128)

    out = pl.pallas_call(
        _mlp_kernel,
        out_shape=jax.ShapeDtypeStruct((G, 1, TB), jnp.float32),
        grid=(G,),
        in_specs=[
            pl.BlockSpec((3, TB), lambda i: (0, i)),            # x tile (streamed)
            pl.BlockSpec((128, 3), lambda i: (0, 0)),           # w1 (resident)
            pl.BlockSpec((128, 1), lambda i: (0, 0)),           # b1
            pl.BlockSpec((64, 128), lambda i: (0, 0)),          # w2
            pl.BlockSpec((64, 1), lambda i: (0, 0)),            # b2
            pl.BlockSpec((64, 1), lambda i: (0, 0)),            # w3
            pl.BlockSpec(memory_space=pltpu.MemorySpace.SMEM),  # b3 scalar
        ],
        out_specs=pl.BlockSpec((1, 1, TB), lambda i: (i, 0, 0)),
        compiler_params=pltpu.CompilerParams(
            dimension_semantics=("parallel",),          # shard grid over TCs
            vmem_limit_bytes=64 << 20,                  # plenty for few-MiB tiles
            allow_input_fusion=[True] + [False] * 6,    # fuse x transpose/pad
        ),
    )(xt, w1b, b1[:, None], w2b, b2[:, None], w3.reshape(-1, 1), b3.reshape(1))

    return out.reshape(B_pad)[:B].reshape(B, 1)


def init_params(key):
    """nn.Linear default init (U(-1/sqrt(fan_in), +)), PyTorch weight layout."""
    ks = jax.random.split(key, 6)

    def linear(kw, kb, fan_in, fan_out):
        bound = 1.0 / (fan_in ** 0.5)
        w = jax.random.uniform(kw, (fan_out, fan_in), jnp.float32, -bound, bound)
        b = jax.random.uniform(kb, (fan_out,), jnp.float32, -bound, bound)
        return w, b

    w1, b1 = linear(ks[0], ks[1], 3, 128)
    w2, b2 = linear(ks[2], ks[3], 128, 64)
    w3, b3 = linear(ks[4], ks[5], 64, 1)
    return (w1, b1, w2, b2, w3, b3)


def reference_forward(x, params):
    w1, b1, w2, b2, w3, b3 = params
    h = jnp.maximum(x @ w1.T + b1, 0.0)
    h = jnp.maximum(h @ w2.T + b2, 0.0)
    return jax.nn.sigmoid(h @ w3.T + b3)


if __name__ == "__main__":
    key = jax.random.PRNGKey(0)
    k_x, k_x2, k_p = jax.random.split(key, 3)
    params = init_params(k_p)

    # Small batch consistent with fc1 = Linear(3, 128).
    B = 8
    x = jax.random.normal(k_x, (B, 3), dtype=jnp.float32)
    out = jax.block_until_ready(drug_interaction_forward(x, params))
    ref = reference_forward(x, params)
    assert out.shape == (B, 1), out.shape
    assert jnp.allclose(out, ref, atol=1e-2, rtol=1e-2), (
        float(jnp.max(jnp.abs(out - ref))))

    # Also exercise the multi-tile grid path (adaptive TB=256 -> two tiles).
    B2 = 300
    x2 = jax.random.normal(k_x2, (B2, 3), dtype=jnp.float32)
    out2 = jax.block_until_ready(drug_interaction_forward(x2, params))
    ref2 = reference_forward(x2, params)
    assert out2.shape == (B2, 1), out2.shape
    assert jnp.allclose(out2, ref2, atol=1e-2, rtol=1e-2), (
        float(jnp.max(jnp.abs(out2 - ref2))))

    print("KERNEL_OK")
</pallas_src>

<mosaic_0001>
module attributes {stable_mosaic.version = 11 : i64} {
  func.func @_mlp_kernel(%arg0: i32, %arg1: memref<3x128xf32, #tpu.memory_space<vmem>>, %arg2: memref<128x3xbf16, #tpu.memory_space<vmem>>, %arg3: memref<128x1xf32, #tpu.memory_space<vmem>>, %arg4: memref<64x128xbf16, #tpu.memory_space<vmem>>, %arg5: memref<64x1xf32, #tpu.memory_space<vmem>>, %arg6: memref<64x1xf32, #tpu.memory_space<vmem>>, %arg7: memref<1xf32, #tpu.memory_space<smem>>, %arg8: memref<1x1x128xf32, #tpu.memory_space<vmem>>) attributes {dimension_semantics = [#tpu.dimension_semantics<parallel>], iteration_bounds = array<i64: 1>, scalar_prefetch = 0 : i64, scratch_operands = 0 : i64, tpu.core_type = #tpu.core_type<tc>, window_params = [{transform_indices = @transform_0, window_bounds = array<i64: 3, 128>}, {pipeline_mode = #tpu.pipeline_mode<synchronous>, transform_indices = @transform_1, window_bounds = array<i64: 128, 3>}, {pipeline_mode = #tpu.pipeline_mode<synchronous>, transform_indices = @transform_2, window_bounds = array<i64: 128, 1>}, {pipeline_mode = #tpu.pipeline_mode<synchronous>, transform_indices = @transform_3, window_bounds = array<i64: 64, 128>}, {pipeline_mode = #tpu.pipeline_mode<synchronous>, transform_indices = @transform_4, window_bounds = array<i64: 64, 1>}, {pipeline_mode = #tpu.pipeline_mode<synchronous>, transform_indices = @transform_5, window_bounds = array<i64: 64, 1>}, {transform_indices = @transform_6, window_bounds = array<i64: 1>}, {transform_indices = @transform_7, window_bounds = array<i64: 1, 1, 128>}]} {
    %c0 = arith.constant 0 : index
    %c0_0 = arith.constant 0 : index
    %0 = vector.load %arg1[%c0, %c0_0] : memref<3x128xf32, #tpu.memory_space<vmem>>, vector<3x128xf32>
    %1 = arith.truncf %0 : vector<3x128xf32> to vector<3x128xbf16>
    %c0_1 = arith.constant 0 : index
    %c0_2 = arith.constant 0 : index
    %2 = vector.load %arg2[%c0_1, %c0_2] : memref<128x3xbf16, #tpu.memory_space<vmem>>, vector<128x3xbf16>
    %cst = arith.constant dense<0.000000e+00> : vector<128x128xf32>
    %3 = tpu.matmul %2, %1, %cst {dimension_numbers = #tpu.dot_dimension_numbers<[1], [0], [0], [1], [0, 0, 1, 1], [], []>} : vector<128x3xbf16>, vector<3x128xbf16>, vector<128x128xf32> -> vector<128x128xf32>
    %c0_3 = arith.constant 0 : index
    %c0_4 = arith.constant 0 : index
    %4 = vector.load %arg3[%c0_3, %c0_4] : memref<128x1xf32, #tpu.memory_space<vmem>>, vector<128x1xf32>
    %5 = vector.broadcast %4 : vector<128x1xf32> to vector<128x128xf32>
    %6 = arith.addf %3, %5 : vector<128x128xf32>
    %cst_5 = arith.constant 0.000000e+00 : f32
    %7 = vector.broadcast %cst_5 : f32 to vector<128x128xf32>
    %8 = arith.maximumf %6, %7 : vector<128x128xf32>
    %c0_6 = arith.constant 0 : index
    %c0_7 = arith.constant 0 : index
    %9 = vector.load %arg4[%c0_6, %c0_7] : memref<64x128xbf16, #tpu.memory_space<vmem>>, vector<64x128xbf16>
    %10 = arith.truncf %8 : vector<128x128xf32> to vector<128x128xbf16>
    %cst_8 = arith.constant dense<0.000000e+00> : vector<64x128xf32>
    %11 = tpu.matmul %9, %10, %cst_8 {dimension_numbers = #tpu.dot_dimension_numbers<[1], [0], [0], [1], [0, 0, 1, 1], [], []>} : vector<64x128xbf16>, vector<128x128xbf16>, vector<64x128xf32> -> vector<64x128xf32>
    %c0_9 = arith.constant 0 : index
    %c0_10 = arith.constant 0 : index
    %12 = vector.load %arg5[%c0_9, %c0_10] : memref<64x1xf32, #tpu.memory_space<vmem>>, vector<64x1xf32>
    %13 = vector.broadcast %12 : vector<64x1xf32> to vector<64x128xf32>
    %14 = arith.addf %11, %13 : vector<64x128xf32>
    %cst_11 = arith.constant 0.000000e+00 : f32
    %15 = vector.broadcast %cst_11 : f32 to vector<64x128xf32>
    %16 = arith.maximumf %14, %15 : vector<64x128xf32>
    %c0_12 = arith.constant 0 : index
    %c0_13 = arith.constant 0 : index
    %17 = vector.load %arg6[%c0_12, %c0_13] : memref<64x1xf32, #tpu.memory_space<vmem>>, vector<64x1xf32>
    %18 = vector.broadcast %17 : vector<64x1xf32> to vector<64x128xf32>
    %19 = arith.mulf %16, %18 : vector<64x128xf32>
    %cst_14 = arith.constant dense<0.000000e+00> : vector<128xf32>
    %20 = vector.multi_reduction <add>, %19, %cst_14 [0] : vector<64x128xf32> to vector<128xf32>
    %21 = vector.shape_cast %20 : vector<128xf32> to vector<1x128xf32>
    %c0_15 = arith.constant 0 : index
    %22 = memref.load %arg7[%c0_15] : memref<1xf32, #tpu.memory_space<smem>>
    %23 = vector.broadcast %22 : f32 to vector<1x128xf32>
    %24 = arith.addf %21, %23 : vector<1x128xf32>
    %25 = arith.negf %24 : vector<1x128xf32>
    %26 = math.exp %25 : vector<1x128xf32>
    %cst_16 = arith.constant 1.000000e+00 : f32
    %27 = vector.broadcast %cst_16 : f32 to vector<1x128xf32>
    %28 = arith.addf %27, %26 : vector<1x128xf32>
    %29 = arith.divf %27, %28 : vector<1x128xf32>
    %c0_17 = arith.constant 0 : index
    %c0_18 = arith.constant 0 : index
    %c0_19 = arith.constant 0 : index
    %30 = vector.load %arg8[%c0_17, %c0_18, %c0_19] : memref<1x1x128xf32, #tpu.memory_space<vmem>>, vector<1x1x128xf32>
    %31 = vector.shape_cast %30 : vector<1x1x128xf32> to vector<1x128xf32>
    %32 = vector.shape_cast %29 : vector<1x128xf32> to vector<1x1x128xf32>
    tpu.vector_store %arg8[%c0_17, %c0_18, %c0_19], %32 {strides = array<i32>} : memref<1x1x128xf32, #tpu.memory_space<vmem>>, vector<1x1x128xf32>,
    return
  }
  func.func @transform_0(%arg0: i32) -> (i32, i32) {
    %c0_i32 = arith.constant 0 : i32
    %c0_i32_0 = arith.constant 0 : i32
    return %c0_i32, %arg0 : i32, i32
  }
  func.func @transform_1(%arg0: i32) -> (i32, i32) {
    %c0_i32 = arith.constant 0 : i32
    %c0_i32_0 = arith.constant 0 : i32
    %c0_i32_1 = arith.constant 0 : i32
    return %c0_i32, %c0_i32_0 : i32, i32
  }
  func.func @transform_2(%arg0: i32) -> (i32, i32) {
    %c0_i32 = arith.constant 0 : i32
    %c0_i32_0 = arith.constant 0 : i32
    %c0_i32_1 = arith.constant 0 : i32
    return %c0_i32, %c0_i32_0 : i32, i32
  }
  func.func @transform_3(%arg0: i32) -> (i32, i32) {
    %c0_i32 = arith.constant 0 : i32
    %c0_i32_0 = arith.constant 0 : i32
    %c0_i32_1 = arith.constant 0 : i32
    return %c0_i32, %c0_i32_0 : i32, i32
  }
  func.func @transform_4(%arg0: i32) -> (i32, i32) {
    %c0_i32 = arith.constant 0 : i32
    %c0_i32_0 = arith.constant 0 : i32
    %c0_i32_1 = arith.constant 0 : i32
    return %c0_i32, %c0_i32_0 : i32, i32
  }
  func.func @transform_5(%arg0: i32) -> (i32, i32) {
    %c0_i32 = arith.constant 0 : i32
    %c0_i32_0 = arith.constant 0 : i32
    %c0_i32_1 = arith.constant 0 : i32
    return %c0_i32, %c0_i32_0 : i32, i32
  }
  func.func @transform_6(%arg0: i32) -> i32 {
    %c0_i32 = arith.constant 0 : i32
    %c0_i32_0 = arith.constant 0 : i32
    return %c0_i32 : i32
  }
  func.func @transform_7(%arg0: i32) -> (i32, i32, i32) {
    %c0_i32 = arith.constant 0 : i32
    %c0_i32_0 = arith.constant 0 : i32
    %c0_i32_1 = arith.constant 0 : i32
    return %arg0, %c0_i32, %c0_i32_0 : i32, i32, i32
  }
}

</mosaic_0001>

<bundles_post_ra>
// kernel: drug_interaction_forward.2
= control target key start
LH: loop header
LB: loop body
LE: loop exit
PB: predicated region body
PF: predicated region fallthrough
CT: control target
= control target key end

     0   :  { %s905_s0 = inlined_call_operand.vmem [shape: bf16[128,3], index: 0, kind: input, shape index: {}]   ;;  %s906_s1 = inlined_call_operand.vmem [shape: f32[128,1], index: 1, kind: input, shape index: {}]   ;;  %s907_s2 = inlined_call_operand.vmem [shape: bf16[64,128], index: 2, kind: input, shape index: {}]   ;;  %s908_s3 = inlined_call_operand.vmem [shape: f32[64,1], index: 3, kind: input, shape index: {}]   ;;  %s909_s4 = inlined_call_operand.vmem [shape: f32[64,1], index: 4, kind: input, shape index: {}]   ;;  %s910_s5 = inlined_call_operand.<no memory space> [shape: f32[1], index: 5, kind: input, shape index: {}]   ;;  %s911_s6 = inlined_call_operand.vmem [shape: f32[3,8], index: 6, kind: input, shape index: {}]   ;;  %s912_s7 = inlined_call_operand.<no memory space> [shape: f32[], index: 7, kind: input, shape index: {}]   ;;  %s913_s8 = inlined_call_operand.vmem [shape: f32[1,1,128], index: 8, kind: output, shape index: {}]  }
   0x1   :  { %v13_v0 = vstv %s912_s7 }
   0x2   :  { %v30_v1 = vlaneseq  ;;  %v690_v2 = vld [vmem:[%s905_s0] sm:$0xff]   ;;  %vm197_vm0 = vcmask 23552   ;;  %v706_v8 = vmov 0   ;;  %vm222_vm3 = vcmask 1040384   ;;  %v63_v10 = vld [vmem:[%s906_s1 + $0x10] sm:$0xff]  ;;  %v62_v11 = vld [vmem:[%s906_s1 + $0x8] sm:$0xff] }
   0x3   :  { %v29_v3 = vld [vmem:[%s911_s6] sm:$0x7]  ;;  %630 = vmatprep.mubr.msk.bf16.mxu0 %vm197_vm0, %v690_v2  ;;  %688 = vset.pattern.permute.xlu0 %v706_v8  ;;  %vm223_vm4 = vcmask 1041408   ;;  %v707_v12 = vmov 65535   ;;  %v64_v14 = vld [vmem:[%s906_s1 + $0x18] sm:$0xff]  ;;  %v66_v19 = vld [vmem:[%s906_s1 + $0x28] sm:$0xff] }
   0x4   :  { %v31_v4 = vshrl.u32 %v30_v1, 7  ;;  %v36_v5 = vand.u32 127, %v30_v1  ;;  %v61_v9 = vld [vmem:[%s906_s1] sm:$0xff]  ;;  %689 = vset.pattern.permute.xlu1 %v706_v8  ;;  %v224_v13 = vsel %vm222_vm3, 4294967295, %v707_v12  ;;  %v67_v21 = vld [vmem:[%s906_s1 + $0x30] sm:$0xff]  ;;  %v691_v22 = vld [vmem:[%s905_s0 + $0x8] sm:$0xff]  }
   0x5   :  { %79 = vperm.xlu0 %688, %v61_v9   ;;  %89 = vperm.xlu1 %689, %v63_v10   ;;  %v65_v15 = vld [vmem:[%s906_s1 + $0x20] sm:$0xff]  ;;  %v225_v17 = vsel %vm223_vm4, %v224_v13, 0  ;;  %v692_v23 = vld [vmem:[%s905_s0 + $0x10] sm:$0xff]   ;;  %v68_v24 = vld [vmem:[%s906_s1 + $0x38] sm:$0xff] }
   0x6   :  { %vm33_vm1 = vcmp.lt.s32.totalorder %v31_v4, 3  ;;  %vm38_vm2 = vcmp.lt.s32.totalorder %v36_v5, 8  ;;  %v69_v25 = vld [vmem:[%s906_s1 + $0x40] sm:$0xff]  ;;  %v70_v26 = vld [vmem:[%s906_s1 + $0x48] sm:$0xff]  ;;  %v71_v27 = vld [vmem:[%s906_s1 + $0x50] sm:$0xff] }
   0x7   :  { %v34_v6 = vsel %vm33_vm1, %v29_v3, %v13_v0  ;;  %v693_v28 = vld [vmem:[%s905_s0 + $0x18] sm:$0xff]   ;;  %v694_v30 = vld [vmem:[%s905_s0 + $0x20] sm:$0xff]   ;;  %v74_v32 = vld [vmem:[%s906_s1 + $0x68] sm:$0xff] }
   0x8   :  { %v39_v7 = vsel %vm38_vm2, %v34_v6, %v13_v0  ;;  %v72_v29 = vld [vmem:[%s906_s1 + $0x58] sm:$0xff]  ;;  %v73_v31 = vld [vmem:[%s906_s1 + $0x60] sm:$0xff]  ;;  %v75_v33 = vld [vmem:[%s906_s1 + $0x70] sm:$0xff] }
   0x9   :  { %41 = vst [vmem:[#allocation8] sm:$0xf] %v39_v7  ;;  %84 = vperm.xlu0 %688, %v62_v11   ;;  %94 = vperm.xlu1 %689, %v64_v14   ;;  %v695_v34 = vld [vmem:[%s905_s0 + $0x28] sm:$0xff]   ;;  %v76_v35 = vld [vmem:[%s906_s1 + $0x78] sm:$0xff]  ;;  %v696_v36 = vld [vmem:[%s905_s0 + $0x30] sm:$0xff]  }
   0xa   :  { %v358_v37 = vld [vmem:[%s908_s3] sm:$0xff]  ;;  %v359_v38 = vld [vmem:[%s908_s3 + $0x8] sm:$0xff]  ;;  %v360_v39 = vld [vmem:[%s908_s3 + $0x10] sm:$0xff] }
   0xb   :  { %v697_v40 = vld [vmem:[%s905_s0 + $0x38] sm:$0xff]   ;;  %v503_v42 = vld [vmem:[%s909_s4] sm:$0xff]  ;;  %v504_v43 = vld [vmem:[%s909_s4 + $0x8] sm:$0xff] }
   0xc   :  { %v361_v41 = vld [vmem:[%s908_s3 + $0x18] sm:$0xff]  ;;  %v362_v44 = vld [vmem:[%s908_s3 + $0x20] sm:$0xff]  ;;  %v505_v45 = vld [vmem:[%s909_s4 + $0x10] sm:$0xff] }
   0xd   :  { %99 = vperm.xlu0 %688, %v65_v15   ;;  %104 = vperm.xlu1 %689, %v66_v19   ;;  %v363_v46 = vld [vmem:[%s908_s3 + $0x28] sm:$0xff]  ;;  %v506_v47 = vld [vmem:[%s909_s4 + $0x18] sm:$0xff]  ;;  %v364_v48 = vld [vmem:[%s908_s3 + $0x30] sm:$0xff] }
   0xe   :  { %v507_v49 = vld [vmem:[%s909_s4 + $0x20] sm:$0xff]  ;;  %v365_v50 = vld [vmem:[%s908_s3 + $0x38] sm:$0xff]  ;;  %v508_v51 = vld [vmem:[%s909_s4 + $0x28] sm:$0xff] }
   0xf   :  { %v509_v52 = vld [vmem:[%s909_s4 + $0x30] sm:$0xff]  ;;  %v510_v53 = vld [vmem:[%s909_s4 + $0x38] sm:$0xff]  ;;  %v698_v54 = vld [vmem:[%s907_s2] sm:$0xff]  }
  0x10   :  { %v43_v16 = vld [vmem:[#allocation8] sm:$0x7]  ;;  %v699_v55 = vld [vmem:[%s907_s2 + $0x10] sm:$0xff]  }
  0x11   :  { %v44_v18 = vpack.c.bf16 %v43_v16, %v43_v16  ;;  %109 = vperm.xlu0 %688, %v67_v21   ;;  %114 = vperm.xlu1 %689, %v68_v24  }
  0x12   :  { %666 = vmatprep.mubr.bf16.mxu1 %v699_v55 }
  0x13   :  { %v227_v20 = vand.u32 %v225_v17, %v44_v18 }
  0x15   :  { %628 = vmatprep.subr.bf16.mxu0 %v227_v20  ;;  %119 = vperm.xlu0 %688, %v69_v25  }
  0x16   :  { %629 = vmatpush3.bf16.msra.mxu0 %v227_v20  ;;  %124 = vperm.xlu1 %689, %v70_v26  }
  0x19   :  { %631 = vmatmul.mubr.msk.bf16.vlgmr.msra.gmra.mrb[0].mxu0 %vm197_vm0, %v691_v22  ;;  %129 = vperm.xlu0 %688, %v71_v27  }
  0x1a   :  { %634 = vmatprep.mubr.msk.bf16.mxu0 %vm197_vm0, %v692_v23  ;;  %134 = vperm.xlu1 %689, %v72_v29  }
  0x1d   :  { %139 = vperm.xlu0 %688, %v73_v31  }
  0x1e   :  { %144 = vperm.xlu1 %689, %v74_v32  }
  0x21   :  { %635 = vmatmul.mubr.msk.bf16.gmra.mrb[4].mxu0 %vm197_vm0, %v693_v28  ;;  %149 = vperm.xlu0 %688, %v75_v33  }
  0x22   :  { %638 = vmatprep.mubr.msk.bf16.mxu0 %vm197_vm0, %v694_v30  ;;  %154 = vperm.xlu1 %689, %v76_v35  }
  0x25   :  { %368 = vperm.xlu0 %688, %v358_v37  }
  0x26   :  { %373 = vperm.xlu1 %689, %v359_v38  }
  0x29   :  { %639 = vmatmul.mubr.msk.bf16.gmra.mrb[8].mxu0 %vm197_vm0, %v695_v34  ;;  %378 = vperm.xlu0 %688, %v360_v39  }
  0x2a   :  { %642 = vmatprep.mubr.msk.bf16.mxu0 %vm197_vm0, %v696_v36  ;;  %383 = vperm.xlu1 %689, %v361_v41  }
  0x2d   :  { %513 = vperm.xlu0 %688, %v503_v42  }
  0x2e   :  { %518 = vperm.xlu1 %689, %v504_v43  }
  0x31   :  { %643 = vmatmul.mubr.msk.bf16.gmra.mrb[12].mxu0 %vm197_vm0, %v697_v40  ;;  %388 = vperm.xlu0 %688, %v362_v44  }
  0x32   :  { %523 = vperm.xlu1 %689, %v505_v45   ;;  %662 = vmatprep.mubr.bf16.mxu0 %v698_v54 }
  0x35   :  { %393 = vperm.xlu0 %688, %v363_v46  }
  0x36   :  { %528 = vperm.xlu1 %689, %v506_v47  }
  0x39   :  { %398 = vperm.xlu0 %688, %v364_v48  }
  0x3a   :  { %533 = vperm.xlu1 %689, %v507_v49  }
  0x3d   :  { %403 = vperm.xlu0 %688, %v365_v50  }
  0x3e   :  { %538 = vperm.xlu1 %689, %v508_v51  }
  0x41   :  { %543 = vperm.xlu0 %688, %v509_v52  }
  0x42   :  { %548 = vperm.xlu1 %689, %v510_v53  }
  0x84   :  { %v80_v56 = vpop.permute.xlu0 %79  ;;  %v90_v57 = vpop.permute.xlu1 %89 }
  0x88   :  { %v85_v58 = vpop.permute.xlu0 %84  ;;  %v95_v59 = vpop.permute.xlu1 %94 }
  0x8c   :  { %v100_v60 = vpop.permute.xlu0 %99  ;;  %v105_v61 = vpop.permute.xlu1 %104 }
  0x90   :  { %v110_v62 = vpop.permute.xlu0 %109  ;;  %v115_v2 = vpop.permute.xlu1 %114 }
  0x94   :  { %v120_v10 = vpop.permute.xlu0 %119 }
  0x95   :  { %v125_v14 = vpop.permute.xlu1 %124 }
  0x98   :  { %v130_v23 = vpop.permute.xlu0 %129 }
  0x99   :  { %v135_v27 = vpop.permute.xlu1 %134 }
  0x9c   :  { %v140_v35 = vpop.permute.xlu0 %139 }
  0x9d   :  { %v145_v40 = vpop.permute.xlu1 %144 }
  0xa0   :  { %v150_v47 = vpop.permute.xlu0 %149 }
  0xa1   :  { %v155_v52 = vpop.permute.xlu1 %154 }
  0xec   :  { %v632_v63 = vpop.f32.mrb[0].mxu0 }
  0xed   :  { %v272_v0 = vadd.f32 %v632_v63, %v90_v57  ;;  %v263_v1 = vpop.f32.mrb[1].mxu0 }
  0xee   :  { %v264_v3 = vadd.f32 %v263_v1, %v80_v56  ;;  %v633_v4 = vpop.f32.mrb[2].mxu0  ;;  %v701_v1 = vld [vmem:[%s907_s2 + $0x18] sm:$0xff]  }
  0xef   :  { %v275_v5 = vadd.f32 %v633_v4, %v95_v59  ;;  %v266_v6 = vpop.f32.mrb[3].mxu0  ;;  %v328_v8 = vmax.f32 %v272_v0, 0.0  ;;  %v700_v0 = vld [vmem:[%s907_s2 + $0x8] sm:$0xff]  }
  0xf0   :  { %v267_v7 = vadd.f32 %v266_v6, %v85_v58  ;;  %v326_v11 = vmax.f32 %v264_v3, 0.0  ;;  %v374_v3 = vpop.permute.xlu1 %373 }
  0xf1   :  { %v329_v9 = vmax.f32 %v275_v5, 0.0 }
  0xf2   :  { %v327_v12 = vmax.f32 %v267_v7, 0.0 }
  0xf3   :  { %v351_v13 = vpack.c.bf16 %v329_v9, %v328_v8 }
  0xf4   :  { %v350_v15 = vpack.c.bf16 %v327_v12, %v326_v11  ;;  %v636_v16 = vpop.f32.mrb[4].mxu0  ;;  %v384_v5 = vpop.permute.xlu1 %383 }
  0xf5   :  { %v288_v17 = vadd.f32 %v636_v16, %v110_v62  ;;  %v279_v18 = vpop.f32.mrb[5].mxu0 }
  0xf6   :  { %v280_v19 = vadd.f32 %v279_v18, %v100_v60  ;;  %v637_v20 = vpop.f32.mrb[6].mxu0  ;;  %646 = vmatprep.subr.bf16.mxu0 %v350_v15  ;;  %670 = vmatprep.subr.bf16.mxu1 %v350_v15 }
  0xf7   :  { %v291_v21 = vadd.f32 %v637_v20, %v115_v2  ;;  %v282_v22 = vpop.f32.mrb[7].mxu0  ;;  %647 = vmatpush3.bf16.msra.mxu0 %v350_v15  ;;  %678 = vmatpush3.bf16.msra.mxu1 %v350_v15  ;;  %v332_v25 = vmax.f32 %v288_v17, 0.0  ;;  %v369_v2 = vpop.permute.xlu0 %368 }
  0xf8   :  { %v283_v24 = vadd.f32 %v282_v22, %v105_v61  ;;  %648 = vmatprep.subr.bf16.mxu0 %v351_v13  ;;  %671 = vmatprep.subr.bf16.mxu1 %v351_v13  ;;  %v330_v28 = vmax.f32 %v280_v19, 0.0  ;;  %v519_v7 = vpop.permute.xlu1 %518 }
  0xf9   :  { %v333_v26 = vmax.f32 %v291_v21, 0.0 }
  0xfa   :  { %v331_v29 = vmax.f32 %v283_v24, 0.0 }
  0xfb   :  { %v353_v30 = vpack.c.bf16 %v333_v26, %v332_v25  ;;  %649 = vmatpush3.bf16.msra.mxu0 %v351_v13  ;;  %679 = vmatpush3.bf16.msra.mxu1 %v351_v13  ;;  %v379_v4 = vpop.permute.xlu0 %378 }
  0xfc   :  { %v352_v31 = vpack.c.bf16 %v331_v29, %v330_v28  ;;  %v640_v32 = vpop.f32.mrb[8].mxu0  ;;  %v524_v9 = vpop.permute.xlu1 %523 }
  0xfd   :  { %v304_v33 = vadd.f32 %v640_v32, %v130_v23  ;;  %v295_v34 = vpop.f32.mrb[9].mxu0 }
  0xfe   :  { %v296_v36 = vadd.f32 %v295_v34, %v120_v10  ;;  %v641_v37 = vpop.f32.mrb[10].mxu0  ;;  %650 = vmatprep.subr.bf16.mxu0 %v352_v31  ;;  %672 = vmatprep.subr.bf16.mxu1 %v352_v31 }
  0xff   :  { %v307_v38 = vadd.f32 %v641_v37, %v135_v27  ;;  %v298_v39 = vpop.f32.mrb[11].mxu0  ;;  %651 = vmatpush3.bf16.msra.mxu0 %v352_v31  ;;  %680 = vmatpush3.bf16.msra.mxu1 %v352_v31  ;;  %v336_v42 = vmax.f32 %v304_v33, 0.0  ;;  %v514_v6 = vpop.permute.xlu0 %513 }
 0x100   :  { %v299_v41 = vadd.f32 %v298_v39, %v125_v14  ;;  %652 = vmatprep.subr.bf16.mxu0 %v353_v30  ;;  %673 = vmatprep.subr.bf16.mxu1 %v353_v30  ;;  %v334_v44 = vmax.f32 %v296_v36, 0.0  ;;  %v529_v11 = vpop.permute.xlu1 %528 }
 0x101   :  { %v337_v43 = vmax.f32 %v307_v38, 0.0 }
 0x102   :  { %v335_v45 = vmax.f32 %v299_v41, 0.0 }
 0x103   :  { %v355_v46 = vpack.c.bf16 %v337_v43, %v336_v42  ;;  %653 = vmatpush3.bf16.msra.mxu0 %v353_v30  ;;  %681 = vmatpush3.bf16.msra.mxu1 %v353_v30  ;;  %v389_v8 = vpop.permute.xlu0 %388 }
 0x104   :  { %v354_v48 = vpack.c.bf16 %v335_v45, %v334_v44  ;;  %v644_v49 = vpop.f32.mrb[12].mxu0  ;;  %v534_v29 = vpop.permute.xlu1 %533 }
 0x105   :  { %v320_v50 = vadd.f32 %v644_v49, %v150_v47  ;;  %v311_v51 = vpop.f32.mrb[13].mxu0 }
 0x106   :  { %v312_v53 = vadd.f32 %v311_v51, %v140_v35  ;;  %v645_v54 = vpop.f32.mrb[14].mxu0  ;;  %654 = vmatprep.subr.bf16.mxu0 %v354_v48  ;;  %674 = vmatprep.subr.bf16.mxu1 %v354_v48 }
 0x107   :  { %v323_v55 = vadd.f32 %v645_v54, %v155_v52  ;;  %v314_v56 = vpop.f32.mrb[15].mxu0  ;;  %655 = vmatpush3.bf16.msra.mxu0 %v354_v48  ;;  %682 = vmatpush3.bf16.msra.mxu1 %v354_v48  ;;  %v340_v58 = vmax.f32 %v320_v50, 0.0  ;;  %v394_v10 = vpop.permute.xlu0 %393 }
 0x108   :  { %v315_v57 = vadd.f32 %v314_v56, %v145_v40  ;;  %656 = vmatprep.subr.bf16.mxu0 %v355_v46  ;;  %675 = vmatprep.subr.bf16.mxu1 %v355_v46  ;;  %v338_v60 = vmax.f32 %v312_v53, 0.0  ;;  %v539_v43 = vpop.permute.xlu1 %538 }
 0x109   :  { %v341_v59 = vmax.f32 %v323_v55, 0.0 }
 0x10a   :  { %v339_v61 = vmax.f32 %v315_v57, 0.0 }
 0x10b   :  { %v357_v62 = vpack.c.bf16 %v341_v59, %v340_v58  ;;  %657 = vmatpush3.bf16.msra.mxu0 %v355_v46  ;;  %683 = vmatpush3.bf16.msra.mxu1 %v355_v46  ;;  %v399_v25 = vpop.permute.xlu0 %398 }
 0x10c   :  { %v356_v63 = vpack.c.bf16 %v339_v61, %v338_v60  ;;  %v549_v53 = vpop.permute.xlu1 %548 }
 0x10e   :  { %658 = vmatprep.subr.bf16.mxu0 %v356_v63  ;;  %676 = vmatprep.subr.bf16.mxu1 %v356_v63 }
 0x10f   :  { %659 = vmatpush3.bf16.msra.mxu0 %v356_v63  ;;  %684 = vmatpush3.bf16.msra.mxu1 %v356_v63  ;;  %v404_v38 = vpop.permute.xlu0 %403 }
 0x110   :  { %660 = vmatprep.subr.bf16.mxu0 %v357_v62  ;;  %677 = vmatprep.subr.bf16.mxu1 %v357_v62 }
 0x113   :  { %661 = vmatpush3.bf16.msra.mxu0 %v357_v62  ;;  %685 = vmatpush3.bf16.msra.mxu1 %v357_v62  ;;  %v544_v50 = vpop.permute.xlu0 %543  ;;  %v573_v62 = vstv %s910_s5 }
 0x116   :  { %663 = vmatmul.mubr.bf16.vlgmr.msra.gmra.mrb[16].mxu0 %v700_v0  ;;  %667 = vmatmul.mubr.bf16.vlgmr.msra.gmra.mrb[0].mxu1 %v701_v1 }
 0x1e9   :  { %v664_v12 = vpop.f32.mrb[16].mxu0  ;;  %v668_v13 = vpop.f32.mrb[0].mxu1 }
 0x1ea   :  { %v464_v14 = vpop.f32.mrb[17].mxu0  ;;  %v480_v15 = vpop.f32.mrb[1].mxu1  ;;  %v473_v16 = vadd.f32 %v664_v12, %v379_v4  ;;  %v489_v35 = vadd.f32 %v668_v13, %v399_v25 }
 0x1eb   :  { %v465_v17 = vadd.f32 %v464_v14, %v369_v2  ;;  %v665_v18 = vpop.f32.mrb[18].mxu0  ;;  %v669_v19 = vpop.f32.mrb[2].mxu1  ;;  %v481_v27 = vadd.f32 %v480_v15, %v389_v8 }
 0x1ec   :  { %v467_v20 = vpop.f32.mrb[19].mxu0  ;;  %v483_v21 = vpop.f32.mrb[3].mxu1  ;;  %v476_v23 = vadd.f32 %v665_v18, %v384_v5  ;;  %v497_v26 = vmax.f32 %v473_v16, 0.0  ;;  %v492_v40 = vadd.f32 %v669_v19, %v404_v38  ;;  %v501_v44 = vmax.f32 %v489_v35, 0.0 }
 0x1ed   :  { %v495_v22 = vmax.f32 %v465_v17, 0.0  ;;  %v468_v24 = vadd.f32 %v467_v20, %v374_v3  ;;  %v484_v33 = vadd.f32 %v483_v21, %v394_v10  ;;  %v499_v36 = vmax.f32 %v481_v27, 0.0 }
 0x1ee   :  { %v498_v31 = vmax.f32 %v476_v23, 0.0  ;;  %v553_v34 = vmul.f32 %v524_v9, %v497_v26  ;;  %v502_v47 = vmax.f32 %v492_v40, 0.0  ;;  %v557_v51 = vmul.f32 %v544_v50, %v501_v44 }
 0x1ef   :  { %v496_v28 = vmax.f32 %v468_v24, 0.0  ;;  %v551_v30 = vmul.f32 %v514_v6, %v495_v22  ;;  %v500_v42 = vmax.f32 %v484_v33, 0.0  ;;  %v555_v45 = vmul.f32 %v534_v29, %v499_v36 }
 0x1f0   :  { %v554_v39 = vmul.f32 %v529_v11, %v498_v31  ;;  %v558_v54 = vmul.f32 %v549_v53, %v502_v47 }
 0x1f1   :  { %v552_v32 = vmul.f32 %v519_v7, %v496_v28  ;;  %v556_v48 = vmul.f32 %v539_v43, %v500_v42 }
 0x1f3   :  { %v559_v37 = vadd.f32 %v552_v32, %v551_v30 }
 0x1f5   :  { %v560_v41 = vadd.f32 %v559_v37, %v553_v34 }
 0x1f7   :  { %v561_v46 = vadd.f32 %v560_v41, %v554_v39 }
 0x1f9   :  { %v562_v49 = vadd.f32 %v561_v46, %v555_v45 }
 0x1fb   :  { %v563_v52 = vadd.f32 %v562_v49, %v556_v48 }
 0x1fd   :  { %v564_v55 = vadd.f32 %v563_v52, %v557_v51 }
 0x1ff   :  { %v565_v56 = vadd.f32 %v564_v55, %v558_v54 }
 0x201   :  { %v566_v57 = vrot.slane %v565_v56, 4 }
 0x203   :  { %v567_v58 = vadd.f32 %v566_v57, %v565_v56 }
 0x205   :  { %v568_v59 = vrot.slane %v567_v58, 2 }
 0x207   :  { %v569_v60 = vadd.f32 %v568_v59, %v567_v58 }
 0x209   :  { %v570_v61 = vrot.slane %v569_v60, 1 }
 0x20b   :  { %v571_v63 = vadd.f32 %v570_v61, %v569_v60 }
 0x20d   :  { %v574_v0 = vadd.f32 %v573_v62, %v571_v63 }
 0x20f   :  { %v606_v1 = vmul.f32 -1.442695, %v574_v0 }
 0x211   :  { %702 = vpow2.f32 %v606_v1 }
 0x21b   :  { %v703_v2 = vpop.eup %702 }
 0x21c   :  { %v578_v3 = vadd.f32 1.0, %v703_v2 }
 0x21e   :  { %704 = vrcp.f32 %v578_v3 }
 0x228   :  { %v705_v4 = vpop.eup %704 }
 0x229   :  { %581 = vst [vmem:[%s913_s8] sm:$0x1] %v705_v4 }

</bundles_post_ra>
